<compile_context>
chip_gen: v7x
topology: tpu7x:2x2x1
jax: 0.10.0
libtpu: 0.0.40
codegen_flags: <defaults>
</compile_context>

<pallas_src>
import functools

import jax
import jax.numpy as jnp
import numpy as np
from jax.experimental import pallas as pl
from jax.experimental.pallas import tpu as pltpu


def _project3d_kernel(p_ref, pts_ref, out_ref, *, eps):
    """Per-tile body.

    p_ref   : (B, 12) f32 in SMEM — row-major 3x4 projection matrix per batch,
              with the output normalization pre-folded into rows 0 and 1.
    pts_ref : (4, TN) VMEM tile of homogeneous points.
    out_ref : (2, TN) VMEM tile; row 0 = x, row 1 = y.
    """
    b = pl.program_id(0)

    pts = pts_ref[...].astype(jnp.float32)  # (4, TN)
    r0 = pts[0:1, :]
    r1 = pts[1:2, :]
    r2 = pts[2:3, :]
    r3 = pts[3:4, :]

    def proj_row(r):
        # 4 broadcast multiply-adds on the VPU; scalars come straight from
        # SMEM (no MXU push/pop, no tiny (4,4) VMEM DMA per step).
        return (p_ref[b, 4 * r + 0] * r0
                + p_ref[b, 4 * r + 1] * r1
                + p_ref[b, 4 * r + 2] * r2
                + p_ref[b, 4 * r + 3] * r3)

    x = proj_row(0)                       # already scaled by 2 / (W - 1)
    y = proj_row(1)                       # already scaled by 2 / (H - 1)
    z = proj_row(2) + eps                 # unscaled depth + eps

    # One reciprocal (EUP slot) + two Newton steps instead of two divides.
    inv_z = pl.reciprocal(z, approx=True)
    inv_z = inv_z * (2.0 - z * inv_z)
    inv_z = inv_z * (2.0 - z * inv_z)

    xy = jnp.concatenate([x, y], axis=0)  # (2, TN): single lane-dense store
    out_ref[...] = (xy * inv_z - 1.0).astype(out_ref.dtype)


def _pick_lane_tile(n, cap=32768):
    """Largest multiple of 128 that divides n and is <= cap (else n itself)."""
    if n <= cap or n % 128 != 0:
        return n
    tn = (cap // 128) * 128
    while tn > 0 and n % tn != 0:
        tn -= 128
    return tn if tn > 0 else n


def project3d_s(points, K, T, *, height, width, eps=1e-7):
    """points: (B, 4, H*W), K: (B, 4, 4), T: (B, 4, 4) -> (B, H, W, 2)."""
    B, four, N = points.shape
    assert four == 4 and N == height * width

    # Fold K @ T and the output normalization into one 3x4 matrix per batch.
    #   out_x = cam_x/z * 2/(W-1) - 1  ==  (cam_x * 2/(W-1)) / z - 1
    P = jnp.matmul(K.astype(jnp.float32), T.astype(jnp.float32))[:, :3, :]
    scale = jnp.array(
        [2.0 / (width - 1), 2.0 / (height - 1), 1.0], jnp.float32)
    P_scaled = (P * scale[None, :, None]).reshape(B, 12)

    tn = _pick_lane_tile(N)
    grid = (B, N // tn)

    out = pl.pallas_call(
        functools.partial(_project3d_kernel, eps=float(eps)),
        out_shape=jax.ShapeDtypeStruct((B, 2, N), points.dtype),
        grid=grid,
        in_specs=[
            # Per-batch projection matrices: whole array in SMEM.
            pl.BlockSpec(memory_space=pltpu.MemorySpace.SMEM),
            # Points: (4, TN) lane-dense tiles.
            pl.BlockSpec((pl.Squeezed(), 4, tn), lambda b, n: (b, 0, n)),
        ],
        out_specs=pl.BlockSpec((pl.Squeezed(), 2, tn), lambda b, n: (b, 0, n)),
        compiler_params=pltpu.CompilerParams(
            dimension_semantics=("parallel", "parallel")),
    )(P_scaled, points)

    # TODO(synk): the consumer-facing (B, H, W, 2) layout still requires this
    # XLA reshape+transpose (one extra HBM read+write of the output); an
    # in-kernel x/y lane interleave would remove it but has no clean jnp-level
    # expression that lowers to a single XLU zip.
    return out.reshape(B, 2, height, width).transpose(0, 2, 3, 1)


def _reference(points, K, T, *, height, width, eps=1e-7):
    B = points.shape[0]
    P = jnp.matmul(K, T)[:, :3, :]
    cam = jnp.matmul(P, points)
    pix = cam[:, :2, :] / (cam[:, 2:3, :] + eps)
    pix = pix.reshape(B, 2, height, width).transpose(0, 2, 3, 1)
    x = pix[..., 0] / (width - 1)
    y = pix[..., 1] / (height - 1)
    pix = jnp.stack([x, y], axis=-1)
    return (pix - 0.5) * 2.0


if __name__ == "__main__":
    B, H, W = 2, 16, 16
    N = H * W
    key = jax.random.PRNGKey(0)
    k_pts, k_T = jax.random.split(key)

    # Homogeneous 3D points (last row = 1), positive depth so z stays away
    # from zero.
    xyz = jax.random.uniform(k_pts, (B, 3, N), jnp.float32,
                             minval=0.5, maxval=2.0)
    points = jnp.concatenate([xyz, jnp.ones((B, 1, N), jnp.float32)], axis=1)

    # Simple pinhole intrinsics, batched.
    K_single = jnp.array([[0.58 * W, 0.0, 0.5 * W, 0.0],
                          [0.0, 1.92 * H, 0.5 * H, 0.0],
                          [0.0, 0.0, 1.0, 0.0],
                          [0.0, 0.0, 0.0, 1.0]], jnp.float32)
    K = jnp.broadcast_to(K_single, (B, 4, 4))

    # Camera pose: identity rotation plus a small random translation.
    t_vec = 0.1 * jax.random.normal(k_T, (B, 3), jnp.float32)
    T = jnp.broadcast_to(jnp.eye(4, dtype=jnp.float32), (B, 4, 4))
    T = T.at[:, :3, 3].set(t_vec)

    out = project3d_s(points, K, T, height=H, width=W)
    out = jax.block_until_ready(out)

    ref = _reference(points, K, T, height=H, width=W)
    np.testing.assert_allclose(np.asarray(out), np.asarray(ref),
                               rtol=1e-5, atol=1e-5)
    print("KERNEL_OK")
</pallas_src>

<mosaic_0001>
module attributes {stable_mosaic.version = 11 : i64} {
  func.func @_project3d_kernel(%arg0: i32, %arg1: i32, %arg2: memref<2x12xf32, #tpu.memory_space<smem>>, %arg3: memref<1x4x256xf32, #tpu.memory_space<vmem>>, %arg4: memref<1x2x256xf32, #tpu.memory_space<vmem>>) attributes {dimension_semantics = [#tpu.dimension_semantics<parallel>, #tpu.dimension_semantics<parallel>], iteration_bounds = array<i64: 2, 1>, scalar_prefetch = 0 : i64, scratch_operands = 0 : i64, tpu.core_type = #tpu.core_type<tc>, window_params = [{transform_indices = @transform_0, window_bounds = array<i64: 2, 12>}, {transform_indices = @transform_1, window_bounds = array<i64: 1, 4, 256>}, {transform_indices = @transform_2, window_bounds = array<i64: 1, 2, 256>}]} {
    %c0 = arith.constant 0 : index
    %c0_0 = arith.constant 0 : index
    %c0_1 = arith.constant 0 : index
    %0 = vector.load %arg3[%c0, %c0_0, %c0_1] : memref<1x4x256xf32, #tpu.memory_space<vmem>>, vector<1x4x256xf32>
    %1 = vector.shape_cast %0 : vector<1x4x256xf32> to vector<4x256xf32>
    %2 = vector.extract_strided_slice %1 {offsets = [0, 0], sizes = [1, 256], strides = [1, 1]} : vector<4x256xf32> to vector<1x256xf32>
    %3 = vector.extract_strided_slice %1 {offsets = [1, 0], sizes = [1, 256], strides = [1, 1]} : vector<4x256xf32> to vector<1x256xf32>
    %4 = vector.extract_strided_slice %1 {offsets = [2, 0], sizes = [1, 256], strides = [1, 1]} : vector<4x256xf32> to vector<1x256xf32>
    %5 = vector.extract_strided_slice %1 {offsets = [3, 0], sizes = [1, 256], strides = [1, 1]} : vector<4x256xf32> to vector<1x256xf32>
    %6 = arith.index_cast %arg0 : i32 to index
    %c0_2 = arith.constant 0 : index
    %7 = memref.load %arg2[%6, %c0_2] : memref<2x12xf32, #tpu.memory_space<smem>>
    %8 = vector.broadcast %7 : f32 to vector<1x256xf32>
    %9 = arith.mulf %8, %2 : vector<1x256xf32>
    %10 = arith.index_cast %arg0 : i32 to index
    %c1 = arith.constant 1 : index
    %11 = memref.load %arg2[%10, %c1] : memref<2x12xf32, #tpu.memory_space<smem>>
    %12 = vector.broadcast %11 : f32 to vector<1x256xf32>
    %13 = arith.mulf %12, %3 : vector<1x256xf32>
    %14 = arith.addf %9, %13 : vector<1x256xf32>
    %15 = arith.index_cast %arg0 : i32 to index
    %c2 = arith.constant 2 : index
    %16 = memref.load %arg2[%15, %c2] : memref<2x12xf32, #tpu.memory_space<smem>>
    %17 = vector.broadcast %16 : f32 to vector<1x256xf32>
    %18 = arith.mulf %17, %4 : vector<1x256xf32>
    %19 = arith.addf %14, %18 : vector<1x256xf32>
    %20 = arith.index_cast %arg0 : i32 to index
    %c3 = arith.constant 3 : index
    %21 = memref.load %arg2[%20, %c3] : memref<2x12xf32, #tpu.memory_space<smem>>
    %22 = vector.broadcast %21 : f32 to vector<1x256xf32>
    %23 = arith.mulf %22, %5 : vector<1x256xf32>
    %24 = arith.addf %19, %23 : vector<1x256xf32>
    %25 = arith.index_cast %arg0 : i32 to index
    %c4 = arith.constant 4 : index
    %26 = memref.load %arg2[%25, %c4] : memref<2x12xf32, #tpu.memory_space<smem>>
    %27 = vector.broadcast %26 : f32 to vector<1x256xf32>
    %28 = arith.mulf %27, %2 : vector<1x256xf32>
    %29 = arith.index_cast %arg0 : i32 to index
    %c5 = arith.constant 5 : index
    %30 = memref.load %arg2[%29, %c5] : memref<2x12xf32, #tpu.memory_space<smem>>
    %31 = vector.broadcast %30 : f32 to vector<1x256xf32>
    %32 = arith.mulf %31, %3 : vector<1x256xf32>
    %33 = arith.addf %28, %32 : vector<1x256xf32>
    %34 = arith.index_cast %arg0 : i32 to index
    %c6 = arith.constant 6 : index
    %35 = memref.load %arg2[%34, %c6] : memref<2x12xf32, #tpu.memory_space<smem>>
    %36 = vector.broadcast %35 : f32 to vector<1x256xf32>
    %37 = arith.mulf %36, %4 : vector<1x256xf32>
    %38 = arith.addf %33, %37 : vector<1x256xf32>
    %39 = arith.index_cast %arg0 : i32 to index
    %c7 = arith.constant 7 : index
    %40 = memref.load %arg2[%39, %c7] : memref<2x12xf32, #tpu.memory_space<smem>>
    %41 = vector.broadcast %40 : f32 to vector<1x256xf32>
    %42 = arith.mulf %41, %5 : vector<1x256xf32>
    %43 = arith.addf %38, %42 : vector<1x256xf32>
    %44 = arith.index_cast %arg0 : i32 to index
    %c8 = arith.constant 8 : index
    %45 = memref.load %arg2[%44, %c8] : memref<2x12xf32, #tpu.memory_space<smem>>
    %46 = vector.broadcast %45 : f32 to vector<1x256xf32>
    %47 = arith.mulf %46, %2 : vector<1x256xf32>
    %48 = arith.index_cast %arg0 : i32 to index
    %c9 = arith.constant 9 : index
    %49 = memref.load %arg2[%48, %c9] : memref<2x12xf32, #tpu.memory_space<smem>>
    %50 = vector.broadcast %49 : f32 to vector<1x256xf32>
    %51 = arith.mulf %50, %3 : vector<1x256xf32>
    %52 = arith.addf %47, %51 : vector<1x256xf32>
    %53 = arith.index_cast %arg0 : i32 to index
    %c10 = arith.constant 10 : index
    %54 = memref.load %arg2[%53, %c10] : memref<2x12xf32, #tpu.memory_space<smem>>
    %55 = vector.broadcast %54 : f32 to vector<1x256xf32>
    %56 = arith.mulf %55, %4 : vector<1x256xf32>
    %57 = arith.addf %52, %56 : vector<1x256xf32>
    %58 = arith.index_cast %arg0 : i32 to index
    %c11 = arith.constant 11 : index
    %59 = memref.load %arg2[%58, %c11] : memref<2x12xf32, #tpu.memory_space<smem>>
    %60 = vector.broadcast %59 : f32 to vector<1x256xf32>
    %61 = arith.mulf %60, %5 : vector<1x256xf32>
    %62 = arith.addf %57, %61 : vector<1x256xf32>
    %cst = arith.constant 1.000000e-07 : f32
    %63 = vector.broadcast %cst : f32 to vector<1x256xf32>
    %64 = arith.addf %62, %63 : vector<1x256xf32>
    %65 = tpu.reciprocal %64 {approx = true} : vector<1x256xf32> -> vector<1x256xf32>
    %66 = arith.mulf %64, %65 : vector<1x256xf32>
    %cst_3 = arith.constant 2.000000e+00 : f32
    %67 = vector.broadcast %cst_3 : f32 to vector<1x256xf32>
    %68 = arith.subf %67, %66 : vector<1x256xf32>
    %69 = arith.mulf %65, %68 : vector<1x256xf32>
    %70 = arith.mulf %64, %69 : vector<1x256xf32>
    %cst_4 = arith.constant 2.000000e+00 : f32
    %71 = vector.broadcast %cst_4 : f32 to vector<1x256xf32>
    %72 = arith.subf %71, %70 : vector<1x256xf32>
    %73 = arith.mulf %69, %72 : vector<1x256xf32>
    %74 = tpu.concatenate %24, %43 in 0 : vector<1x256xf32>, vector<1x256xf32> -> vector<2x256xf32>
    %75 = vector.broadcast %73 : vector<1x256xf32> to vector<2x256xf32>
    %76 = arith.mulf %74, %75 : vector<2x256xf32>
    %cst_5 = arith.constant 1.000000e+00 : f32
    %77 = vector.broadcast %cst_5 : f32 to vector<2x256xf32>
    %78 = arith.subf %76, %77 : vector<2x256xf32>
    %c0_6 = arith.constant 0 : index
    %c0_7 = arith.constant 0 : index
    %c0_8 = arith.constant 0 : index
    %79 = vector.load %arg4[%c0_6, %c0_7, %c0_8] : memref<1x2x256xf32, #tpu.memory_space<vmem>>, vector<1x2x256xf32>
    %80 = vector.shape_cast %79 : vector<1x2x256xf32> to vector<2x256xf32>
    %81 = vector.shape_cast %78 : vector<2x256xf32> to vector<1x2x256xf32>
    tpu.vector_store %arg4[%c0_6, %c0_7, %c0_8], %81 {strides = array<i32>} : memref<1x2x256xf32, #tpu.memory_space<vmem>>, vector<1x2x256xf32>,
    return
  }
  func.func @transform_0(%arg0: i32, %arg1: i32) -> (i32, i32) {
    %c0_i32 = arith.constant 0 : i32
    %c0_i32_0 = arith.constant 0 : i32
    %c0_i32_1 = arith.constant 0 : i32
    return %c0_i32, %c0_i32_0 : i32, i32
  }
  func.func @transform_1(%arg0: i32, %arg1: i32) -> (i32, i32, i32) {
    %c0_i32 = arith.constant 0 : i32
    %c0_i32_0 = arith.constant 0 : i32
    return %arg0, %c0_i32, %arg1 : i32, i32, i32
  }
  func.func @transform_2(%arg0: i32, %arg1: i32) -> (i32, i32, i32) {
    %c0_i32 = arith.constant 0 : i32
    %c0_i32_0 = arith.constant 0 : i32
    return %arg0, %c0_i32, %arg1 : i32, i32, i32
  }
}

</mosaic_0001>

<bundles_post_ra>
// kernel: tpu_custom_call.1
= control target key start
LH: loop header
LB: loop body
LE: loop exit
PB: predicated region body
PF: predicated region fallthrough
CT: control target
= control target key end

     0   :  { %7 = vsyncpa [#allocation5], 0  ;;  %s965_s0 = inlined_call_operand.hbm [shape: f32[2,12], index: 0, kind: input, shape index: {}]   ;;  %s966_s1 = inlined_call_operand.hbm [shape: f32[2,4,256], index: 1, kind: input, shape index: {}]   ;;  %s967_s2 = inlined_call_operand.hbm [shape: f32[2,2,256], index: 2, kind: output, shape index: {}]  }
   0x1   :  { %8 = vsyncpa [#allocation3], 0 }
   0x2   :  { %10 = vsyncpa [#allocation3 + $0x1], 0 }
   0x3   :  { %11 = vsyncpa [#allocation4], 0 }
   0x4   :  { %13 = vsyncpa [#allocation4 + $0x1], 0  ;;  %s723_s9 = smov 0   ;;  %s725_s10 = smov 0  }
   0x5   :  { %s727_s11 = smov 0   ;;  %s729_s12 = smov 0  }
   0x6   :  { %s731_s13 = smov 0   ;;  %s733_s14 = smov 0  }
   0x7 LB: > { %s467_s15 = sadd.s32 4294967295, %s703_s14   ;;  %s468_s16 = sadd.s32 4294967294, %s703_s14   ;;  %s703_s14 = sphi %s733_s14, %s19_s14   ;;  %s699_s13 = sphi %s731_s13, %s991_s13   ;;  %s695_s12 = sphi %s729_s12, %s990_s12   ;;  %s691_s11 = sphi %s727_s11, %s989_s11   ;;  %s687_s10 = sphi %s725_s10, %s988_s10   ;;  %s683_s9 = sphi %s723_s9, %s987_s9  }
   0x8   : > { %p74_p0 = scmp.ne.s32.totalorder %s687_s10, %s683_s9  ;;  %p757_p1 = scmp.eq.s32.totalorder %s467_s15, 0 }
   0x9   : > { %p761_p2 = scmp.eq.s32.totalorder %s467_s15, 1  ;;  %p106_p3 = scmp.eq.s32.totalorder %s468_s16, 1 }
   0xa   : > { %s972_s17 = scalar_select %p757_p1, 1, 0 }
   0xb   : > { %p767_p4 = por %p757_p1, %p74_p0  ;;  %p469_p5 = scmp.ge.s32.totalorder %s703_s14, 1 }
   0xc   : > { %p772_p6 = por %p106_p3, %p74_p0  ;;  %p113_p7 = scmp.lt.s32.totalorder %s703_s14, 3 }
   0xd   : > { %s974_s19 = scalar_select %p767_p4, 1, 0 }
   0xe   : > { %s975_s20 = scalar_select %p772_p6, 1, 0 }
   0xf   : > { %p777_p8 = pnand %p469_p5, %p113_p7  ;;  %s31_s22 = sadd.s32 1, %s699_s13 }
  0x10   : > { %p791_p12 = scmp.ge.s32.totalorder %s31_s22, 2  ;;  %s61_s25 = sadd.s32 1, %s691_s11 }
  0x11   : > { %p507_p10 = pneg %p777_p8  ;;  %p68_p13 = scmp.ne.s32.totalorder %s691_s11, %s687_s10 }
  0x12   : > { %p69_p0 = scmp.eq.s32.totalorder %s703_s14, 0  ;;  %s574_s28 = scalar_lea.hbm %s965_s0, 32 }
  0x13   : > { %p787_p11 = pnand %p507_p10, %p757_p1  ;;  %p575_p3 = scmp.ne.s32.totalorder %s965_s0, %s574_s28 }
  0x14   : > { %p581_p9 = scmp.lt.u32.totalorder %s574_s28, %s965_s0 }
  0x15   : > { %p576_p5 = pneg %p787_p11 }
  0x17   : > { %p577_p7 = pnand %p576_p5, %p575_p3 }
  0x19   : > { %p578_p10 = pneg %p577_p7 }
  0x1b   : > { %p583_p6 = pnand %p581_p9, %p578_p10 }
  0x1d   : > { %586 = shalt.err (!%p583_p6)
}
  0x1e   : > { %s705_s5 = smov [#allocation2]   ;;  %s993_s22 = smov (%p791_p12, %s31_s22), 0 }
  0x1f   : > { %510 = dma.hbm_to_smem (!%p787_p11), %s965_s0, 32, %s705_s5, [#allocation5]  }
  0x20   : > { %p822_p6 = por %p69_p0, %p68_p13  ;;  %p831_p9 = por %p761_p2, %p68_p13 }
  0x21   : > { %s56_s16 = ssub.s32 %s699_s13, %s993_s22  ;;  %p520_p3 = scmp.lt.s32.totalorder %s703_s14, 2 }
  0x22   : > { %s980_s15 = scalar_select %p831_p9, 1, 0 }
  0x23   : > { %p59_p5 = scmp.eq.s32.totalorder %s56_s16, 0  ;;  %s135_s23 = sand.u32 1, %s691_s11  }
  0x24   : > { %s472_s24 = sshll.u32 %s135_s23, 3  ;;  %s497_s27 = sshll.u32 %s699_s13, 7 }
  0x25   : > { %s840_s26 = scalar_select %p59_p5, %s691_s11, %s61_s25  }
  0x26   : > { %s846_s30 = scalar_lea.hbm %s966_s1, %s497_s27  ;;  %s139_s18 = scalar_lea.vmem [#allocation6], %s472_s24 }
  0x27   : > { %s149_s3 = sshll.u32 %s139_s18, 4  ;;  %p852_p2 = pnand %p520_p3, %p822_p6  ;;  %s848_s3 = int_to_ptr.vmem [resolvable:$true] %s149_s3 }
  0x28   : > { %s136_s25 = scalar_lea.sflag [#allocation3], %s135_s23  ;;  %s587_s5 = scalar_lea.hbm %s846_s30, 128 }
  0x29   : > { %p588_p11 = scmp.ne.s32.totalorder %s846_s30, %s587_s5  ;;  %p589_p12 = pneg %p852_p2 }
  0x2a   : > { %s592_s16 = scalar_lea.hbm %s966_s1, 256  ;;  %p593_p7 = scmp.lt.u32.totalorder %s846_s30, %s966_s1 }
  0x2b   : > { %p590_p13 = pnand %p589_p12, %p588_p11  ;;  %p594_p10 = scmp.lt.u32.totalorder %s592_s16, %s587_s5 }
  0x2c   : > { %p596_p3 = scmp.lt.u32.totalorder %s587_s5, %s846_s30 }
  0x2d   : > { %p591_p0 = pneg %p590_p13  ;;  %p595_p6 = por %p594_p10, %p593_p7 }
  0x2f   : > { %p597_p5 = por %p596_p3, %p595_p6 }
  0x31   : > { %p598_p9 = pnand %p597_p5, %p591_p0 }
  0x33   : > { %601 = shalt.err (!%p598_p9)
}
  0x34   : > { %s602_s23 = scalar_lea.vmem %s848_s3, 128  ;;  %s706_s27 = smov [#allocation6]  }
  0x35   : > { %p603_p11 = scmp.ne.s32.totalorder %s848_s3, %s602_s23  ;;  %s607_s28 = sshll.u32 %s706_s27, 4  ;;  %s608_s28 = int_to_ptr.vmem [resolvable:$false] %s607_s28 }
  0x36   : > { %s609_s29 = scalar_lea.vmem %s608_s28, 256  ;;  %p610_p1 = scmp.lt.s32.totalorder %s848_s3, %s608_s28 }
  0x37   : > { %p605_p13 = pnand %p603_p11, %p589_p12  ;;  %p611_p7 = scmp.lt.s32.totalorder %s609_s29, %s602_s23 }
  0x39   : > { %p606_p4 = pneg %p605_p13  ;;  %p612_p10 = por %p611_p7, %p610_p1 }
  0x3b   : > { %p613_p6 = pnand %p612_p10, %p606_p4 }
  0x3d   : > { %616 = shalt.err (!%p613_p6)
}
  0x3e   : > { %514 = dma.hbm_to_vmem [thread:$0]  (!%p852_p2), %s846_s30, 128, %s848_s3, %s136_s25  }
  0x3f   : > { %158 = sbr.rel (%p777_p8) target bundleno = 146 (0x92), region = 28  ;;  %p982_p9 = scmp.ne.s32.totalorder (!%p777_p8), %s972_s17, 0 }
  0x46   : > { %670 = dma.done.wait (%p982_p9), [#allocation5], 32  }
  0x47   : > { %672 = vsyncadd (%p982_p9), [#allocation5], 4294967264  ;;  %s888_s18 = sand.u32 1, %s687_s10   ;;  %p983_p1 = scmp.ne.s32.totalorder %s974_s19, 0 }
  0x48   : > { %s477_s5 = sshll.u32 %s888_s18, 3  ;;  %s165_s4 = scalar_lea.sflag [#allocation3], %s888_s18 }
  0x49   : > { %s168_s6 = scalar_lea.vmem [#allocation6], %s477_s5 }
  0x4a   : > { %674 = dma.done.wait (%p983_p1), %s165_s4, 128  }
  0x4b   : > { %676 = vsyncadd (%p983_p1), %s165_s4, 4294967168 }
  0x4c   : > { %173 = sfence }
  0x4d   : > { %s897_s21 = sshll.u32 %s695_s12, 7  ;;  %v192_v0 = vld [vmem:[%s168_s6] sm:$0xff]  ;;  %v295_v34 = vlaneseq  ;;  %vm316_vm0 = vcmask 1040384   ;;  %p984_p8 = scmp.ne.s32.totalorder %s980_s15, 0 }
  0x4e   : > { %s255_s17 = sadd.s32 8, %s897_s21  ;;  %s259_s3 = sadd.s32 9, %s897_s21 }
  0x4f   : > { %s256_s30 = sld [smem:[#allocation2 + %s255_s17]]  ;;  %s268_s25 = sadd.s32 10, %s897_s21  ;;  %v296_v41 = vshrl.u32 %v295_v34, 7 }
  0x50   : > { %s260_s7 = sld [smem:[#allocation2 + %s259_s3]]  ;;  %s277_s19 = sadd.s32 11, %s897_s21 }
  0x51   : > { %s269_s16 = sld [smem:[#allocation2 + %s268_s25]]  ;;  %s197_s24 = sadd.s32 1, %s897_s21  ;;  %v297_v50 = vsub.s32 0, %v296_v41  ;;  %v301_v51 = vsub.s32 4, %v296_v41 }
  0x52   : > { %s278_s8 = sld [smem:[#allocation2 + %s277_s19]]  ;;  %s228_s23 = sadd.s32 5, %s897_s21 }
  0x53   : > { %s206_s27 = sadd.s32 2, %s897_s21  ;;  %s198_s28 = sld [smem:[#allocation2 + %s197_s24]] }
  0x54   : > { %s229_s29 = sld [smem:[#allocation2 + %s228_s23]]  ;;  %s224_s5 = sadd.s32 4, %s897_s21 }
  0x55   : > { %v257_v1 = vstv %s256_s30  ;;  %s237_s4 = sadd.s32 6, %s897_s21  ;;  %s194_s6 = sld [smem:[#allocation2 + %s897_s21]] }
  0x56   : > { %v261_v2 = vstv %s260_s7  ;;  %v258_v4 = vmul.f32 %v257_v1, %v192_v0  ;;  %s207_s17 = sld [smem:[#allocation2 + %s206_s27]]  ;;  %s215_s30 = sadd.s32 3, %s897_s21 }
  0x57   : > { %v270_v3 = vstv %s269_s16  ;;  %v262_v5 = vmul.f32 %v261_v2, %v192_v0  ;;  %s225_s3 = sld [smem:[#allocation2 + %s224_s5]]  ;;  %s246_s7 = sadd.s32 7, %s897_s21 }
  0x58   : > { %v271_v6 = vmul.f32 %v270_v3, %v192_v0  ;;  %v279_v7 = vstv %s278_s8  ;;  %s238_s25 = sld [smem:[#allocation2 + %s237_s4]]  ;;  %s478_s21 = sshll.u32 %s888_s18, 2 }
  0x59   : > { %v486_v8 = vrot.slane %v262_v5, 9  ;;  %v280_v9 = vmul.f32 %v279_v7, %v192_v0  ;;  %s216_s16 = sld [smem:[#allocation2 + %s215_s30]]  ;;  %v199_v15 = vstv %s198_s28  ;;  %s189_s8 = scalar_lea.vmem [#allocation7], %s478_s21 }
  0x5a   : > { %v487_v10 = vrot.slane %v271_v6, 10  ;;  %v230_v16 = vstv %s229_s29  ;;  %s247_s19 = sld [smem:[#allocation2 + %s246_s7]]  ;;  %v200_v19 = vmul.f32 %v199_v15, %v192_v0  ;;  %s371_s24 = sshll.u32 %s189_s8, 4  ;;  %s913_s24 = int_to_ptr.vmem [resolvable:$true] %s371_s24 }
  0x5b   : > { %v267_v11 = vadd.f32 %v486_v8, %v258_v4  ;;  %v488_v12 = vrot.slane %v280_v9, 11  ;;  %v195_v18 = vstv %s194_s6  ;;  %v231_v21 = vmul.f32 %v230_v16, %v192_v0  ;;  %s498_s23 = sshll.u32 %s695_s12, 6  ;;  %s355_s5 = scalar_lea.sflag [#allocation4], %s888_s18 }
  0x5c   : > { %v208_v20 = vstv %s207_s17  ;;  %v196_v24 = vmul.f32 %v195_v18, %v192_v0  ;;  %v480_v27 = vrot.slane %v200_v19, 9  ;;  %s918_s29 = scalar_lea.hbm %s967_s2, %s498_s23  ;;  %s617_s4 = scalar_lea.vmem %s913_s24, 64 }
  0x5d   : > { %v276_v13 = vadd.f32 %v487_v10, %v267_v11  ;;  %v226_v22 = vstv %s225_s3  ;;  %v209_v25 = vmul.f32 %v208_v20, %v192_v0  ;;  %v483_v29 = vrot.slane %v231_v21, 9  ;;  %p618_p4 = scmp.ne.s32.totalorder %s913_s24, %s617_s4  ;;  %s707_s12 = smov [#allocation7]  }
  0x5e   : > { %v239_v23 = vstv %s238_s25  ;;  %v227_v28 = vmul.f32 %v226_v22, %v192_v0  ;;  %v205_v35 = vadd.f32 %v480_v27, %v196_v24  ;;  %s621_s6 = sshll.u32 %s707_s12, 4  ;;  %s622_s6 = int_to_ptr.vmem [resolvable:$false] %s621_s6 }
  0x5f   : > { %v285_v14 = vadd.f32 %v488_v12, %v276_v13  ;;  %v217_v26 = vstv %s216_s16  ;;  %v240_v30 = vmul.f32 %v239_v23, %v192_v0  ;;  %v481_v32 = vrot.slane %v209_v25, 10  ;;  %p619_p2 = pnand %p618_p4, %p984_p8  ;;  %s623_s17 = scalar_lea.vmem %s622_s6, 128 }
  0x60   : > { %v248_v31 = vstv %s247_s19  ;;  %v218_v33 = vmul.f32 %v217_v26, %v192_v0  ;;  %v236_v36 = vadd.f32 %v483_v29, %v227_v28  ;;  %p624_p0 = scmp.lt.s32.totalorder %s913_s24, %s622_s6  ;;  %p625_p3 = scmp.lt.s32.totalorder %s623_s17, %s617_s4 }
  0x61   : > { %v286_v17 = vadd.f32 1e-07, %v285_v14  ;;  %v484_v37 = vrot.slane %v240_v30, 10  ;;  %v249_v38 = vmul.f32 %v248_v31, %v192_v0  ;;  %v214_v42 = vadd.f32 %v481_v32, %v205_v35  ;;  %p620_p12 = pneg %p619_p2 }
  0x62   : > { %v482_v43 = vrot.slane %v218_v33, 11  ;;  %p626_p5 = por %p625_p3, %p624_p0 }
  0x63   : > { %572 = vrcp.f32 %v286_v17  ;;  %v245_v44 = vadd.f32 %v484_v37, %v236_v36  ;;  %v485_v45 = vrot.slane %v249_v38, 11 }
  0x64   : > { %v223_v48 = vadd.f32 %v482_v43, %v214_v42  ;;  %p627_p11 = pnand %p626_p5, %p620_p12 }
  0x65   : > { %v254_v49 = vadd.f32 %v485_v45, %v245_v44 }
  0x66   : > { %v298_v54 = vrot.slane %v223_v48, %v297_v50  ;;  %v302_v55 = vrot.slane %v223_v48, %v301_v51 }
  0x67   : > { %v309_v56 = vrot.slane %v254_v49, %v297_v50  ;;  %v313_v57 = vrot.slane %v254_v49, %v301_v51 }
  0x69   : > { %v317_v61 = vsel %vm316_vm0, %v298_v54, %v309_v56  ;;  %v318_v62 = vsel %vm316_vm0, %v302_v55, %v313_v57 }
  0x6d   : > { %v573_v39 = vpop.eup %572 }
  0x6e   : > { %v288_v40 = vmul.f32 %v573_v39, %v286_v17 }
  0x70   : > { %v289_v46 = vsub.f32 2.0, %v288_v40 }
  0x72   : > { %v290_v47 = vmul.f32 %v573_v39, %v289_v46 }
  0x74   : > { %v291_v52 = vmul.f32 %v290_v47, %v286_v17 }
  0x76   : > { %v292_v53 = vsub.f32 2.0, %v291_v52 }
  0x78   : > { %v293_v58 = vmul.f32 %v292_v53, %v290_v47 }
  0x7a   : > { %v323_v59 = vrot.slane %v293_v58, %v297_v50  ;;  %v327_v60 = vrot.slane %v293_v58, %v301_v51 }
  0x7c   : > { %v333_v63 = vrot.slane %v323_v59, %v297_v50  ;;  %v337_v0 = vrot.slane %v327_v60, %v297_v50 }
  0x7e   : > { %v338_v1 = vmul.f32 %v333_v63, %v317_v61  ;;  %v339_v2 = vmul.f32 %v337_v0, %v318_v62 }
  0x80   : > { %v489_v3 = vadd.f32 -1.0, %v338_v1  ;;  %v490_v4 = vadd.f32 -1.0, %v339_v2 }
  0x82   : > { %v344_v5 = vcombine.low %v489_v3, %v490_v4 }
  0x84   : > { %491 = vst.sshfl [vmem:[%s189_s8] sm:$0x33 pattern:$0x76325410] %v344_v5 }
  0x85   : > { %630 = shalt.err (!%p627_p11)
}
  0x86   : > { %s631_s18 = scalar_lea.hbm %s918_s29, 64  ;;  %s635_s25 = scalar_lea.hbm %s967_s2, 128 }
  0x87   : > { %p632_p13 = scmp.ne.s32.totalorder %s918_s29, %s631_s18  ;;  %p636_p6 = scmp.lt.u32.totalorder %s918_s29, %s967_s2 }
  0x88   : > { %p637_p9 = scmp.lt.u32.totalorder %s635_s25, %s631_s18  ;;  %p639_p4 = scmp.lt.u32.totalorder %s631_s18, %s918_s29 }
  0x89   : > { %p633_p7 = pnand %p632_p13, %p984_p8 }
  0x8a   : > { %p638_p1 = por %p637_p9, %p636_p6 }
  0x8b   : > { %p634_p10 = pneg %p633_p7 }
  0x8c   : > { %p640_p2 = por %p639_p4, %p638_p1 }
  0x8e   : > { %p641_p12 = pnand %p640_p2, %p634_p10 }
  0x90   : > { %644 = shalt.err (!%p641_p12)
}
  0x91   : > { %505 = dma.vmem_to_hbm [thread:$0]  (%p984_p8), %s913_s24, 64, %s918_s29, %s355_s5  }
  0x92 PF: > { %s383_s19 = sand.u32 1, %s683_s9   ;;  %p985_p0 = scmp.ne.s32.totalorder %s975_s20, 0 }
  0x93   : > { %p986_p3 = scmp.ge.s32.totalorder %s703_s14, 2  ;;  %s384_s21 = scalar_lea.sflag [#allocation4], %s383_s19 }
  0x95   : > { %p516_p5 = pnand %p986_p3, %p985_p0 }
  0x97   : > { %678 = dma.done.wait (!%p516_p5), %s384_s21, 64  }
  0x98   : > { %680 = vsyncadd (!%p516_p5), %s384_s21, 4294967232  ;;  %s19_s14 = sadd.s32 1, %s703_s14   ;;  %s987_s9 = smov %s687_s10 }
  0x99   : > { %p16_p11 = scmp.ge.s32.totalorder %s19_s14, 4   ;;  %s988_s10 = smov %s691_s11 }
  0x9a   : > { %s989_s11 = smov %s840_s26  ;;  %s990_s12 = smov %s699_s13 }
  0x9b   : > { %s991_s13 = smov %s993_s22  ;;  %18 = sbr.rel (!%p16_p11) target bundleno = 7 (0x7), region = 78 }
  0xa2   :  { %389 = vsyncpa [#allocation3], 1 }
  0xa3   :  { %391 = vsyncpa [#allocation3 + $0x1], 1 }
  0xa4   :  { %392 = vsyncpa [#allocation4], 1 }
  0xa5   :  { %394 = vsyncpa [#allocation4 + $0x1], 1 }
  0xa6   :  { %395 = vsyncpa [#allocation5], 1 }
  0xa7   :  { %397 = vsyncpa [#allocation5 + $0x1], 1 }

</bundles_post_ra>
